<compile_context>
chip_gen: v7x
topology: tpu7x:2x2x1
jax: 0.10.0
libtpu: 0.0.40
codegen_flags: <defaults>
</compile_context>

<pallas_src>
import jax
import jax.numpy as jnp
from jax import lax
from jax.experimental import pallas as pl
from jax.experimental.pallas import tpu as pltpu


def _round_up(n, m):
    return ((n + m - 1) // m) * m


def mlp_kernel(x_ref, w1_ref, b1_ref, w2_ref, b2_ref, w3_ref, b3_ref, o_ref):
    x = x_ref[...]                                                     # (TB, D) natural layout

    # layer1 + tanh: contract the D axes directly -> transposed activation (H1, TB).
    # (Same 'qd,kd->qk' pattern as q @ k^T; lowers to one MXU matmul, no host transpose.)
    h1 = lax.dot_general(
        w1_ref[...], x,
        dimension_numbers=(((1,), (1,)), ((), ())),
        preferred_element_type=jnp.float32,
    ) + b1_ref[...]                                                    # (H1, TB)
    h1 = jnp.tanh(h1)

    # layer2 + relu: (H2, H1) @ (H1, TB) -> (H2, TB)
    h2 = jnp.dot(w2_ref[...], h1, preferred_element_type=jnp.float32) + b2_ref[...]
    h2 = jnp.maximum(h2, 0.0)

    # layer3 (output_size == 1): VPU broadcast-multiply + sublane reduce
    # (w3 passed as an (H2, 1) column, b3 as (1, 1)).
    logits = jnp.sum(h2 * w3_ref[...], axis=0, keepdims=True) + b3_ref[...]   # (1, TB)

    # Softmax over the class axis (dim=1 of the original (B, out) layout == axis 0
    # here). With output_size == 1 this is identically 1.0; kept for fidelity.
    m = jnp.max(logits, axis=0, keepdims=True)
    e = jnp.exp(logits - m)
    denom = jnp.sum(e, axis=0, keepdims=True)
    o_ref[...] = e / denom            # exact divide: exp(0)/1 == 1.0 exactly


def _fused_xla_forward(x, w1, b1, w2, b2, w3, b3):
    # Plain fused forward for small batches (XLA fuses this tiny MLP into one kernel).
    h1 = jnp.tanh(x @ w1.T + b1)
    h2 = jnp.maximum(h1 @ w2.T + b2, 0.0)
    logits = h2 @ w3.T + b3
    return jax.nn.softmax(logits, axis=1)


def mlp_forward(x, w1, b1, w2, b2, w3, b3, *, block_b=16384, min_pallas_batch=4096):
    """Forward pass of the adult.py MLP.

    x:  (B, D) float32
    w1: (H1, D),  b1: (H1,)   -- PyTorch nn.Linear layout (out_features, in_features)
    w2: (H2, H1), b2: (H2,)
    w3: (1, H2),  b3: (1,)    -- output_size == 1 as in the original module
    returns: (B, 1) float32 softmax output

    For B < min_pallas_batch the plain fused XLA forward is used (the Pallas
    launch/padding would dominate). Set min_pallas_batch=0 to force the kernel.
    """
    B, D = x.shape
    H1 = w1.shape[0]
    H2 = w2.shape[0]
    assert w3.shape[0] == 1, "kernel is specialized to output_size == 1 (as in the spec)"
    assert block_b % 128 == 0 and block_b >= 128, "batch tile must be a multiple of 128"

    if B < min_pallas_batch:
        return _fused_xla_forward(
            x.astype(jnp.float32), w1, b1, w2, b2, w3, b3
        ).astype(jnp.float32)

    # --- batch tile selection ---------------------------------------------
    B128 = _round_up(B, 128)
    TB = min(block_b, B128)
    if 128 < B128 <= block_b:
        # Whole batch would fit in one tile: split into two grid steps so the
        # "parallel" batch axis can shard across both TensorCores on v7x.
        TB = _round_up((B128 + 1) // 2, 128)
    Bp = _round_up(B, TB)
    grid = (Bp // TB,)

    # --- inputs (natural layout; pad only the batch tail) -------------------
    x_f = x.astype(jnp.float32)
    x_p = jnp.pad(x_f, ((0, Bp - B), (0, 0))) if Bp != B else x_f       # (Bp, D)

    w1f = w1.astype(jnp.float32)                   # (H1, D)
    b1c = b1.reshape(H1, 1).astype(jnp.float32)    # (H1, 1)  column bias
    w2f = w2.astype(jnp.float32)                   # (H2, H1)
    b2c = b2.reshape(H2, 1).astype(jnp.float32)    # (H2, 1)
    w3c = w3.reshape(H2, 1).astype(jnp.float32)    # (H2, 1)  column form for VPU layer-3
    b3c = b3.reshape(1, 1).astype(jnp.float32)     # (1, 1)

    out_t = pl.pallas_call(
        mlp_kernel,
        out_shape=jax.ShapeDtypeStruct((1, Bp), jnp.float32),
        grid=grid,
        in_specs=[
            pl.BlockSpec((TB, D), lambda i: (i, 0)),     # x tile: contiguous HBM row slab
            pl.BlockSpec((H1, D), lambda i: (0, 0)),     # weights/biases: constant index ->
            pl.BlockSpec((H1, 1), lambda i: (0, 0)),     #   DMA'd once, VMEM-resident
            pl.BlockSpec((H2, H1), lambda i: (0, 0)),
            pl.BlockSpec((H2, 1), lambda i: (0, 0)),
            pl.BlockSpec((H2, 1), lambda i: (0, 0)),
            pl.BlockSpec((1, 1), lambda i: (0, 0)),
        ],
        out_specs=pl.BlockSpec((1, TB), lambda i: (0, i)),   # lane-dense output tile
        compiler_params=pltpu.CompilerParams(
            dimension_semantics=("parallel",),   # shard batch tiles across TCs on v7x
        ),
    )(x_p, w1f, b1c, w2f, b2c, w3c, b3c)

    # Back to the original (B, out) layout; drop the padded batch tail
    # (padded columns hold garbage by design -- do not remove this slice).
    return out_t[:, :B].T


def init_params(input_size, hidden1_size, hidden2_size, output_size, seed=0):
    # Deterministic init mimicking nn.Linear's U(-1/sqrt(fan_in), 1/sqrt(fan_in)),
    # in PyTorch layout: W (out_features, in_features), b (out_features,).
    key = jax.random.PRNGKey(seed)
    ks = jax.random.split(key, 6)

    def linear(kw, kb, fan_in, fan_out):
        bound = 1.0 / (fan_in ** 0.5)
        w = jax.random.uniform(kw, (fan_out, fan_in), jnp.float32, -bound, bound)
        b = jax.random.uniform(kb, (fan_out,), jnp.float32, -bound, bound)
        return w, b

    w1, b1 = linear(ks[0], ks[1], input_size, hidden1_size)
    w2, b2 = linear(ks[2], ks[3], hidden1_size, hidden2_size)
    w3, b3 = linear(ks[4], ks[5], hidden2_size, output_size)
    return w1, b1, w2, b2, w3, b3


def reference_forward(x, w1, b1, w2, b2, w3, b3):
    # Plain-JAX reference matching the PyTorch forward exactly.
    h1 = jnp.tanh(x @ w1.T + b1)
    h2 = jnp.maximum(h1 @ w2.T + b2, 0.0)
    logits = h2 @ w3.T + b3
    return jax.nn.softmax(logits, axis=1)


if __name__ == "__main__":
    input_size = 16          # stand-in for X_train_norm.shape[1]
    hidden1_size, hidden2_size, output_size = 20, 10, 1
    params = init_params(input_size, hidden1_size, hidden2_size, output_size, seed=0)

    # 1) Small single-tile batch through the Pallas kernel (force kernel path).
    x_small = jax.random.normal(jax.random.PRNGKey(0), (8, input_size), jnp.float32)
    out_small = jax.block_until_ready(
        mlp_forward(x_small, *params, min_pallas_batch=0))
    ref_small = reference_forward(x_small, *params)
    assert out_small.shape == (8, output_size)
    assert jnp.allclose(out_small, ref_small, atol=1e-5), "small-batch mismatch vs reference"

    # 2) Non-multiple-of-tile batch exercising the multi-step pipelined grid,
    #    batch-tail padding, resident weights and "parallel" semantics (grid=(3,)).
    x_big = jax.random.normal(jax.random.PRNGKey(1), (300, input_size), jnp.float32)
    out_big = jax.block_until_ready(
        mlp_forward(x_big, *params, block_b=128, min_pallas_batch=0))
    ref_big = reference_forward(x_big, *params)
    assert out_big.shape == (300, output_size)
    assert jnp.allclose(out_big, ref_big, atol=1e-5), "tiled-batch mismatch vs reference"

    # 3) Default path: small batches short-circuit to the fused XLA forward.
    out_fast = jax.block_until_ready(mlp_forward(x_big, *params))
    assert jnp.allclose(out_fast, ref_big, atol=1e-5), "small-batch fallback mismatch"

    print("KERNEL_OK")
</pallas_src>

<mosaic_0001>
module attributes {stable_mosaic.version = 11 : i64} {
  func.func @mlp_kernel(%arg0: i32, %arg1: memref<128x16xf32, #tpu.memory_space<vmem>>, %arg2: memref<20x16xf32, #tpu.memory_space<vmem>>, %arg3: memref<20x1xf32, #tpu.memory_space<vmem>>, %arg4: memref<10x20xf32, #tpu.memory_space<vmem>>, %arg5: memref<10x1xf32, #tpu.memory_space<vmem>>, %arg6: memref<10x1xf32, #tpu.memory_space<vmem>>, %arg7: memref<1x1xf32, #tpu.memory_space<vmem>>, %arg8: memref<1x128xf32, #tpu.memory_space<vmem>>) attributes {dimension_semantics = [#tpu.dimension_semantics<parallel>], iteration_bounds = array<i64: 1>, scalar_prefetch = 0 : i64, scratch_operands = 0 : i64, tpu.core_type = #tpu.core_type<tc>, window_params = [{transform_indices = @transform_0, window_bounds = array<i64: 128, 16>}, {pipeline_mode = #tpu.pipeline_mode<synchronous>, transform_indices = @transform_1, window_bounds = array<i64: 20, 16>}, {pipeline_mode = #tpu.pipeline_mode<synchronous>, transform_indices = @transform_2, window_bounds = array<i64: 20, 1>}, {pipeline_mode = #tpu.pipeline_mode<synchronous>, transform_indices = @transform_3, window_bounds = array<i64: 10, 20>}, {pipeline_mode = #tpu.pipeline_mode<synchronous>, transform_indices = @transform_4, window_bounds = array<i64: 10, 1>}, {pipeline_mode = #tpu.pipeline_mode<synchronous>, transform_indices = @transform_5, window_bounds = array<i64: 10, 1>}, {pipeline_mode = #tpu.pipeline_mode<synchronous>, transform_indices = @transform_6, window_bounds = array<i64: 1, 1>}, {transform_indices = @transform_7, window_bounds = array<i64: 1, 128>}]} {
    %c0 = arith.constant 0 : index
    %c0_0 = arith.constant 0 : index
    %0 = vector.load %arg1[%c0, %c0_0] : memref<128x16xf32, #tpu.memory_space<vmem>>, vector<128x16xf32>
    %c0_1 = arith.constant 0 : index
    %c0_2 = arith.constant 0 : index
    %1 = vector.load %arg2[%c0_1, %c0_2] : memref<20x16xf32, #tpu.memory_space<vmem>>, vector<20x16xf32>
    %cst = arith.constant dense<0.000000e+00> : vector<20x128xf32>
    %2 = tpu.matmul %1, %0, %cst {dimension_numbers = #tpu.dot_dimension_numbers<[1], [1], [0], [0], [0, 0, 1, 0], [], []>} : vector<20x16xf32>, vector<128x16xf32>, vector<20x128xf32> -> vector<20x128xf32>
    %c0_3 = arith.constant 0 : index
    %c0_4 = arith.constant 0 : index
    %3 = vector.load %arg3[%c0_3, %c0_4] : memref<20x1xf32, #tpu.memory_space<vmem>>, vector<20x1xf32>
    %4 = vector.broadcast %3 : vector<20x1xf32> to vector<20x128xf32>
    %5 = arith.addf %2, %4 : vector<20x128xf32>
    %6 = math.tanh %5 : vector<20x128xf32>
    %c0_5 = arith.constant 0 : index
    %c0_6 = arith.constant 0 : index
    %7 = vector.load %arg4[%c0_5, %c0_6] : memref<10x20xf32, #tpu.memory_space<vmem>>, vector<10x20xf32>
    %cst_7 = arith.constant dense<0.000000e+00> : vector<10x128xf32>
    %8 = tpu.matmul %7, %6, %cst_7 {dimension_numbers = #tpu.dot_dimension_numbers<[1], [0], [0], [1], [0, 0, 1, 1], [], []>} : vector<10x20xf32>, vector<20x128xf32>, vector<10x128xf32> -> vector<10x128xf32>
    %c0_8 = arith.constant 0 : index
    %c0_9 = arith.constant 0 : index
    %9 = vector.load %arg5[%c0_8, %c0_9] : memref<10x1xf32, #tpu.memory_space<vmem>>, vector<10x1xf32>
    %10 = vector.broadcast %9 : vector<10x1xf32> to vector<10x128xf32>
    %11 = arith.addf %8, %10 : vector<10x128xf32>
    %cst_10 = arith.constant 0.000000e+00 : f32
    %12 = vector.broadcast %cst_10 : f32 to vector<10x128xf32>
    %13 = arith.maximumf %11, %12 : vector<10x128xf32>
    %c0_11 = arith.constant 0 : index
    %c0_12 = arith.constant 0 : index
    %14 = vector.load %arg6[%c0_11, %c0_12] : memref<10x1xf32, #tpu.memory_space<vmem>>, vector<10x1xf32>
    %15 = vector.broadcast %14 : vector<10x1xf32> to vector<10x128xf32>
    %16 = arith.mulf %13, %15 : vector<10x128xf32>
    %cst_13 = arith.constant dense<0.000000e+00> : vector<128xf32>
    %17 = vector.multi_reduction <add>, %16, %cst_13 [0] : vector<10x128xf32> to vector<128xf32>
    %18 = vector.shape_cast %17 : vector<128xf32> to vector<1x128xf32>
    %c0_14 = arith.constant 0 : index
    %c0_15 = arith.constant 0 : index
    %19 = vector.load %arg7[%c0_14, %c0_15] : memref<1x1xf32, #tpu.memory_space<vmem>>, vector<1x1xf32>
    %20 = vector.broadcast %19 : vector<1x1xf32> to vector<1x128xf32>
    %21 = arith.addf %18, %20 : vector<1x128xf32>
    %cst_16 = arith.constant dense<0xFF800000> : vector<128xf32>
    %22 = vector.multi_reduction <maximumf>, %21, %cst_16 [0] : vector<1x128xf32> to vector<128xf32>
    %23 = vector.shape_cast %22 : vector<128xf32> to vector<1x128xf32>
    %24 = arith.subf %21, %23 : vector<1x128xf32>
    %25 = math.exp %24 : vector<1x128xf32>
    %cst_17 = arith.constant dense<0.000000e+00> : vector<128xf32>
    %26 = vector.multi_reduction <add>, %25, %cst_17 [0] : vector<1x128xf32> to vector<128xf32>
    %27 = vector.shape_cast %26 : vector<128xf32> to vector<1x128xf32>
    %28 = arith.divf %25, %27 : vector<1x128xf32>
    %c0_18 = arith.constant 0 : index
    %c0_19 = arith.constant 0 : index
    %29 = vector.load %arg8[%c0_18, %c0_19] : memref<1x128xf32, #tpu.memory_space<vmem>>, vector<1x128xf32>
    tpu.vector_store %arg8[%c0_18, %c0_19], %28 {strides = array<i32>} : memref<1x128xf32, #tpu.memory_space<vmem>>, vector<1x128xf32>,
    return
  }
  func.func @transform_0(%arg0: i32) -> (i32, i32) {
    %c0_i32 = arith.constant 0 : i32
    %c0_i32_0 = arith.constant 0 : i32
    return %arg0, %c0_i32 : i32, i32
  }
  func.func @transform_1(%arg0: i32) -> (i32, i32) {
    %c0_i32 = arith.constant 0 : i32
    %c0_i32_0 = arith.constant 0 : i32
    %c0_i32_1 = arith.constant 0 : i32
    return %c0_i32, %c0_i32_0 : i32, i32
  }
  func.func @transform_2(%arg0: i32) -> (i32, i32) {
    %c0_i32 = arith.constant 0 : i32
    %c0_i32_0 = arith.constant 0 : i32
    %c0_i32_1 = arith.constant 0 : i32
    return %c0_i32, %c0_i32_0 : i32, i32
  }
  func.func @transform_3(%arg0: i32) -> (i32, i32) {
    %c0_i32 = arith.constant 0 : i32
    %c0_i32_0 = arith.constant 0 : i32
    %c0_i32_1 = arith.constant 0 : i32
    return %c0_i32, %c0_i32_0 : i32, i32
  }
  func.func @transform_4(%arg0: i32) -> (i32, i32) {
    %c0_i32 = arith.constant 0 : i32
    %c0_i32_0 = arith.constant 0 : i32
    %c0_i32_1 = arith.constant 0 : i32
    return %c0_i32, %c0_i32_0 : i32, i32
  }
  func.func @transform_5(%arg0: i32) -> (i32, i32) {
    %c0_i32 = arith.constant 0 : i32
    %c0_i32_0 = arith.constant 0 : i32
    %c0_i32_1 = arith.constant 0 : i32
    return %c0_i32, %c0_i32_0 : i32, i32
  }
  func.func @transform_6(%arg0: i32) -> (i32, i32) {
    %c0_i32 = arith.constant 0 : i32
    %c0_i32_0 = arith.constant 0 : i32
    %c0_i32_1 = arith.constant 0 : i32
    return %c0_i32, %c0_i32_0 : i32, i32
  }
  func.func @transform_7(%arg0: i32) -> (i32, i32) {
    %c0_i32 = arith.constant 0 : i32
    %c0_i32_0 = arith.constant 0 : i32
    return %c0_i32, %arg0 : i32, i32
  }
}

</mosaic_0001>

<bundles_post_ra>
// kernel: tpu_custom_call.1
= control target key start
LH: loop header
LB: loop body
LE: loop exit
PB: predicated region body
PF: predicated region fallthrough
CT: control target
= control target key end

     0   :  { %s714_s0 = inlined_call_operand.vmem [shape: f32[128,16], index: 0, kind: input, shape index: {}]   ;;  %s715_s1 = inlined_call_operand.vmem [shape: f32[20,16], index: 1, kind: input, shape index: {}]   ;;  %s716_s2 = inlined_call_operand.vmem [shape: f32[20,1], index: 2, kind: input, shape index: {}]   ;;  %s717_s3 = inlined_call_operand.vmem [shape: f32[10,20], index: 3, kind: input, shape index: {}]   ;;  %s718_s4 = inlined_call_operand.vmem [shape: f32[10,1], index: 4, kind: input, shape index: {}]   ;;  %s719_s5 = inlined_call_operand.vmem [shape: f32[10,1], index: 5, kind: input, shape index: {}]   ;;  %s720_s6 = inlined_call_operand.<no memory space> [shape: f32[1,1], index: 6, kind: input, shape index: {}]   ;;  %s721_s7 = inlined_call_operand.hbm [shape: f32[1,128], index: 7, kind: output, shape index: {}]  }
   0x1   :  { %v12_v0 = vstv %s720_s6 }
   0x2   :  { %13 = vst [vmem:[#allocation2] sm:$0x1] %v12_v0 }
   0x3   :  { %v29_v1 = vld [vmem:[%s714_s0] sm:$0xff]  ;;  %v30_v2 = vld [vmem:[%s714_s0 + $0x8] sm:$0xff]  ;;  %vm66_vm0 = vcmask 130048   ;;  %v537_v3 = vmov 0.0|0.0   ;;  %vm538_vm2 = vmmov 0   ;;  %v539_v6 = vmov 0.0  }
   0x4   :  { %460 = vmatprep.subr.bf16.mxu0 %v537_v3  ;;  %v461_v4 = vpack.c.bf16 %v30_v2, %v29_v1  ;;  %vm593_vm1 = vmpackc.low %vm66_vm0, %vm66_vm0  ;;  %442 = vmatprep.mubr.msk.f32.mxu0 %vm538_vm2, %v539_v6  ;;  %v540_v7 = vmov 0   ;;  %v31_v8 = vld [vmem:[%s714_s0 + $0x10] sm:$0xff]  ;;  %v32_v9 = vld [vmem:[%s714_s0 + $0x18] sm:$0xff] }
   0x5   :  { %501 = vset.pattern.permute.xlu0 %v540_v7  ;;  %502 = vset.pattern.permute.xlu1 %v540_v7  ;;  %v48_v10 = vld [vmem:[%s716_s2] sm:$0xff]  ;;  %v465_v11 = vpack.c.bf16 %v32_v9, %v31_v8  ;;  %v50_v12 = vld [vmem:[%s716_s2 + $0x10] sm:$0xf]  ;;  %v49_v13 = vld [vmem:[%s716_s2 + $0x8] sm:$0xff] }
   0x6   :  { %463 = vmatpush3.bf16.xpose.msk.msra.mxu0 %vm593_vm1, %v461_v4  ;;  %53 = vperm.xlu0 %501, %v48_v10   ;;  %v210_v14 = vld [vmem:[%s718_s4 + $0x8] sm:$0x3] }
   0x7   :  { %464 = vmatprep.subr.bf16.mxu0 %v537_v3  ;;  %63 = vperm.xlu1 %502, %v50_v12  }
   0x8   :  { %14 = vsyncpa [#allocation4], 0  ;;  %v33_v15 = vld [vmem:[%s714_s0 + $0x20] sm:$0xff]  ;;  %v34_v16 = vld [vmem:[%s714_s0 + $0x28] sm:$0xff]  ;;  %vm221_vm3 = vcmask 162816   ;;  %vm228_vm4 = vcmask 1043456   ;;  %v338_v7 = vlaneseq }
   0x9   :  { %v209_v17 = vld [vmem:[%s718_s4] sm:$0xff]  ;;  %v310_v18 = vld [vmem:[%s719_s5 + $0x8] sm:$0x3]  ;;  %v469_v19 = vpack.c.bf16 %v34_v16, %v33_v15  ;;  %v35_v22 = vld [vmem:[%s714_s0 + $0x30] sm:$0xff]  ;;  %vm323_vm5 = vcmask 1041408  }
   0xa   :  { %58 = vperm.xlu0 %501, %v49_v13   ;;  %v309_v20 = vld [vmem:[%s719_s5] sm:$0xff]  ;;  %v36_v23 = vld [vmem:[%s714_s0 + $0x38] sm:$0xff]  ;;  %v38_v26 = vld [vmem:[%s714_s0 + $0x48] sm:$0xff]  ;;  %v339_v10 = vshrl.u32 %v338_v7, 7 }
   0xb   :  { %218 = vperm.xlu1 %502, %v210_v14   ;;  %v332_v21 = vld [vmem:[#allocation2] sm:$0x1]  ;;  %v473_v24 = vpack.c.bf16 %v36_v23, %v35_v22  ;;  %v39_v28 = vld [vmem:[%s714_s0 + $0x50] sm:$0xff]  ;;  %v40_v29 = vld [vmem:[%s714_s0 + $0x58] sm:$0xff] }
   0xc   :  { %v37_v25 = vld [vmem:[%s714_s0 + $0x40] sm:$0xff]  ;;  %v481_v30 = vpack.c.bf16 %v40_v29, %v39_v28  ;;  %v42_v32 = vld [vmem:[%s714_s0 + $0x68] sm:$0xff]  ;;  %v43_v34 = vld [vmem:[%s714_s0 + $0x70] sm:$0xff]  ;;  %v340_v13 = vsub.s32 0, %v339_v10 }
   0xd   :  { %v477_v27 = vpack.c.bf16 %v38_v26, %v37_v25  ;;  %v41_v31 = vld [vmem:[%s714_s0 + $0x60] sm:$0xff]  ;;  %v44_v35 = vld [vmem:[%s714_s0 + $0x78] sm:$0xff]  ;;  %v46_v38 = vld [vmem:[%s715_s1 + $0x8] sm:$0xff] }
   0xe   :  { %467 = vmatpush3.bf16.xpose.msk.msra.mxu0 %vm593_vm1, %v465_v11  ;;  %213 = vperm.xlu0 %501, %v209_v17   ;;  %v485_v33 = vpack.c.bf16 %v42_v32, %v41_v31  ;;  %v489_v36 = vpack.c.bf16 %v44_v35, %v43_v34  ;;  %v45_v37 = vld [vmem:[%s715_s1] sm:$0xff]  ;;  %v47_v39 = vld [vmem:[%s715_s1 + $0x10] sm:$0xf]  ;;  %v208_v57 = vld [vmem:[%s717_s3 + $0x8] sm:$0x3] }
   0xf   :  { %468 = vmatprep.subr.bf16.mxu0 %v537_v3  ;;  %318 = vperm.xlu1 %502, %v310_v18   ;;  %v207_v40 = vld [vmem:[%s717_s3] sm:$0xff]  ;;  %s541_s3 = smov [#allocation3]  }
  0x10   :  { %457 = vmatprep.mubr.msk.f32.mxu1 %vm221_vm3, %v207_v40  ;;  %s356_s4 = sshll.u32 %s541_s3, 4  ;;  %s357_s4 = int_to_ptr.vmem [resolvable:$true] %s356_s4 }
  0x11   :  { %s513_s28 = scalar_lea.vmem %s357_s4, 16  ;;  %s517_s29 = scalar_lea.vmem %s357_s4, 32 }
  0x12   :  { %313 = vperm.xlu0 %501, %v309_v20   ;;  %p514_p0 = scmp.ne.s32.totalorder %s357_s4, %s513_s28  ;;  %p518_p1 = scmp.lt.s32.totalorder %s357_s4, %s357_s4 }
  0x13   :  { %335 = vperm.xlu1 %502, %v332_v21   ;;  %p519_p2 = scmp.lt.s32.totalorder %s517_s29, %s513_s28 }
  0x15   :  { %p520_p3 = por %p519_p2, %p518_p1 }
  0x16   :  { %471 = vmatpush3.bf16.xpose.msk.msra.mxu0 %vm593_vm1, %v469_v19 }
  0x17   :  { %472 = vmatprep.subr.bf16.mxu0 %v537_v3  ;;  %p521_p4 = pnand %p520_p3, %p514_p0 }
  0x1e   :  { %475 = vmatpush3.bf16.xpose.msk.msra.mxu0 %vm593_vm1, %v473_v24 }
  0x1f   :  { %476 = vmatprep.subr.bf16.mxu0 %v537_v3 }
  0x26   :  { %479 = vmatpush3.bf16.xpose.msk.msra.mxu0 %vm593_vm1, %v477_v27 }
  0x27   :  { %480 = vmatprep.subr.bf16.mxu0 %v537_v3 }
  0x2e   :  { %483 = vmatpush3.bf16.xpose.msk.msra.mxu0 %vm593_vm1, %v481_v30 }
  0x2f   :  { %484 = vmatprep.subr.bf16.mxu0 %v537_v3 }
  0x36   :  { %487 = vmatpush3.bf16.xpose.msk.msra.mxu0 %vm593_vm1, %v485_v33 }
  0x37   :  { %488 = vmatprep.subr.bf16.mxu0 %v537_v3 }
  0x3e   :  { %491 = vmatpush3.bf16.xpose.msk.msra.mxu0 %vm593_vm1, %v489_v36 }
  0x45   :  { %443 = vmatmul.mubr.msk.f32.vlgmr.msra.gmra.mrb[0].mxu0 %vm66_vm0, %v45_v37 }
  0x46   :  { %445 = vmatprep.mubr.msk.f32.mxu0 %vm538_vm2, %v539_v6 }
  0x49   :  { %446 = vmatmul.mubr.msk.f32.gmra.mrb[2].mxu0 %vm66_vm0, %v46_v38 }
  0x4a   :  { %448 = vmatprep.mubr.msk.f32.mxu0 %vm538_vm2, %v539_v6 }
  0x4d   :  { %449 = vmatmul.mubr.msk.f32.gmra.mrb[4].mxu0 %vm66_vm0, %v47_v39 }
  0x85   :  { %v54_v41 = vpop.permute.xlu0 %53 }
  0x86   :  { %v64_v49 = vpop.permute.xlu1 %63 }
  0x89   :  { %v59_v45 = vpop.permute.xlu0 %58 }
  0x8a   :  { %v219_v58 = vpop.permute.xlu1 %218 }
  0x8d   :  { %v214_v59 = vpop.permute.xlu0 %213 }
  0x8e   :  { %v319_v1 = vpop.permute.xlu1 %318 }
  0x91   :  { %v314_v3 = vpop.permute.xlu0 %313 }
  0x92   :  { %v336_v15 = vpop.permute.xlu1 %335 }
  0x93   :  { %v341_v17 = vrot.slane %v336_v15, %v340_v13 }
 0x118   :  { %v190_v42 = vpop.f32.mrb[0].mxu0 }
 0x119   :  { %v444_v43 = vpop.f32.mrb[1].mxu0  ;;  %v191_v44 = vadd.f32 %v190_v42, %v54_v41 }
 0x11b   :  { %503 = vtanh.f32 %v191_v44 }
 0x11c   :  { %v195_v46 = vpop.f32.mrb[2].mxu0 }
 0x11d   :  { %v196_v47 = vadd.f32 %v195_v46, %v59_v45  ;;  %v447_v48 = vpop.f32.mrb[3].mxu0 }
 0x11f   :  { %505 = vtanh.f32 %v196_v47 }
 0x120   :  { %v200_v50 = vpop.f32.mrb[4].mxu0 }
 0x121   :  { %v201_v51 = vadd.f32 %v200_v50, %v64_v49  ;;  %v450_v52 = vpop.f32.mrb[5].mxu0 }
 0x123   :  { %507 = vtanh.f32 %v201_v51 }
 0x125   :  { %v504_v53 = vpop.eup %503 }
 0x129   :  { %v506_v54 = vpop.eup %505 }
 0x12a   :  { %v492_v55 = vpack.c.bf16 %v506_v54, %v504_v53 }
 0x12c   :  { %493 = vmatprep.subr.bf16.mxu1 %v492_v55 }
 0x12d   :  { %v508_v56 = vpop.eup %507  ;;  %495 = vmatpush3.bf16.msra.mxu1 %v492_v55 }
 0x12e   :  { %455 = vmatprep.subr.msk.mxu1 %vm228_vm4, %v508_v56 }
 0x131   :  { %456 = vmatpush3.msk.msra.mxu1 %vm228_vm4, %v508_v56 }
 0x132   :  { %458 = vmatmul.mubr.msk.f32.vlgmr.msra.gmra.mrb[0].mxu1 %vm221_vm3, %v208_v57 }
 0x205   :  { %v459_v60 = vpop.f32.mrb[0].mxu1 }
 0x206   :  { %v304_v61 = vadd.f32 %v459_v60, %v219_v58  ;;  %v298_v62 = vpop.f32.mrb[1].mxu1 }
 0x207   :  { %v299_v63 = vadd.f32 %v298_v62, %v214_v59 }
 0x208   :  { %v308_v0 = vmax.f32 %v304_v61, 0.0 }
 0x209   :  { %v307_v2 = vmax.f32 %v299_v63, 0.0 }
 0x20a   :  { %v322_v4 = vmul.f32 %v319_v1, %v308_v0 }
 0x20b   :  { %v321_v5 = vmul.f32 %v314_v3, %v307_v2 }
 0x20c   :  { %v324_v6 = vsel %vm323_vm5, %v322_v4, 0.0 }
 0x20d   :  { %v325_v8 = vadd.f32 %v324_v6, %v321_v5 }
 0x20f   :  { %v326_v9 = vrot.slane %v325_v8, 4 }
 0x211   :  { %v327_v11 = vadd.f32 %v326_v9, %v325_v8 }
 0x213   :  { %v328_v12 = vrot.slane %v327_v11, 2 }
 0x215   :  { %v329_v14 = vadd.f32 %v328_v12, %v327_v11 }
 0x217   :  { %v330_v16 = vrot.slane %v329_v14, 1 }
 0x219   :  { %v331_v18 = vadd.f32 %v330_v16, %v329_v14 }
 0x21b   :  { %v342_v19 = vadd.f32 %v341_v17, %v331_v18 }
 0x21d   :  { %v343_v20 = vsub.f32 %v342_v19, %v342_v19 }
 0x21f   :  { %v344_v21 = vmul.f32 1.442695, %v343_v20 }
 0x221   :  { %509 = vpow2.f32 %v344_v21 }
 0x22b   :  { %v510_v22 = vpop.eup %509 }
 0x22c   :  { %511 = vrcp.f32 %v510_v22 }
 0x236   :  { %v512_v23 = vpop.eup %511 }
 0x237   :  { %v348_v24 = vmul.f32 %v512_v23, %v510_v22 }
 0x239   :  { %349 = vst [vmem:[#allocation3] sm:$0x1] %v348_v24 }
 0x23a   :  { %524 = shalt.err (!%p521_p4)
}
 0x23b   :  { %s525_s30 = scalar_lea.hbm %s721_s7, 16 }
 0x23c   :  { %p526_p5 = scmp.ne.s32.totalorder %s721_s7, %s525_s30  ;;  %p529_p6 = scmp.lt.u32.totalorder %s525_s30, %s721_s7 }
 0x23e   :  { %p531_p7 = pnand %p529_p6, %p526_p5 }
 0x240   :  { %534 = shalt.err (!%p531_p7)
}
 0x241   :  { %359 = dma.vmem_to_hbm [thread:$0]  %s357_s4, 16, %s721_s7, [#allocation4]  }
 0x242   :  { %535 = dma.done.wait [#allocation4], 16  }
 0x243   :  { %536 = vsyncadd [#allocation4], 4294967280 }
 0x244   :  { %363 = vsyncpa [#allocation4], 1 }

</bundles_post_ra>
